<compile_context>
chip_gen: v6e
topology: v6e:2x2x1
jax: 0.10.0
libtpu: 0.0.40
codegen_flags: <defaults>
</compile_context>

<pallas_src>
import functools

import jax
import jax.numpy as jnp
from jax.experimental import pallas as pl
from jax.experimental.pallas import tpu as pltpu

_LANE = 128
_SUBLANE = 8
_MAX_BATCH_TILE = 1024

_ACTIVATIONS = {
    "tanh": jnp.tanh,
    "relu": lambda v: jnp.maximum(v, 0.0),
    "sigmoid": jax.nn.sigmoid,
    "sine": jnp.sin,
    "gelu": jax.nn.gelu,
    "swish": jax.nn.silu,
}


def _round_up(x, m):
    return (x + m - 1) // m * m


def _tpu_vmem_and_cores():
    """Best-effort hardware query; conservative (v7x-safe) defaults if unavailable."""
    vmem_bytes = 64 * 1024 * 1024   # v7x per-TC VMEM; safe lower bound for every generation
    num_cores = 1                   # single TensorCore unless we can prove otherwise
    try:
        info = pltpu.get_tpu_info()
        vmem_bytes = int(getattr(info, "vmem_capacity_bytes", vmem_bytes))
        for attr in ("num_cores", "tensorcores_per_chip", "cores_per_chip"):
            v = getattr(info, attr, None)
            if v:
                num_cores = int(v)
                break
    except Exception:
        pass  # hardware query only; the defaults are safe on every generation
    try:
        dev = jax.devices()[0]
        num_cores = max(num_cores, int(getattr(dev, "num_cores", 1) or 1))
    except Exception:
        pass
    return vmem_bytes, max(1, num_cores)


def _mlp_kernel(num_layers, activation, mxu_dtype, *refs):
    """Fused MLP for one batch tile: all layer weights resident in VMEM.

    refs = (x_ref, w1_ref, b1_ref, ..., wN_ref, bN_ref, o_ref)
    x is already mxu_dtype (cast in the wrapper); weights are (in_pad, out_pad) mxu_dtype;
    biases are (1, out_pad) f32.
    """
    x_ref = refs[0]
    o_ref = refs[-1]
    params = refs[1:-1]

    h = x_ref[...]                                              # mxu_dtype, no extra casts
    for layer in range(num_layers):
        w = params[2 * layer][...]                              # (in_pad, out_pad)
        b = params[2 * layer + 1][...]                          # (1, out_pad) f32
        z = jnp.dot(h, w, preferred_element_type=jnp.float32) + b   # MXU, f32 accumulate + bias
        if layer < num_layers - 1:
            # activation in f32 (EUP for tanh/gelu), cast fused into the epilogue so only one
            # mxu-dtype copy of the activation stays live between layers.
            h = activation(z).astype(mxu_dtype)
        else:
            o_ref[...] = z.astype(o_ref.dtype)                  # final Linear: no activation


def feedforward_nn(x, weights, biases, activation="tanh", *,
                   batch_tile=None, mxu_dtype=jnp.bfloat16):
    """Pallas implementation of FeedforwardNN.forward.

    x:       (B, input_dim)
    weights: PyTorch-convention Linear weights, each (out_features, in_features)
    biases:  each (out_features,)
    batch_tile: rows of x per grid step; None = auto-size from the VMEM budget.
    mxu_dtype:  dtype fed to the MXU (bf16 is the fast path on v5e/v6e/v7x; f32 also works).
    """
    act_fn = _ACTIVATIONS[activation] if isinstance(activation, str) else activation
    x = jnp.asarray(x)
    B, in_dim = x.shape
    num_layers = len(weights)
    dims = [in_dim] + [int(w.shape[0]) for w in weights]
    out_dim = dims[-1]
    dims_pad = [_round_up(d, _LANE) for d in dims]
    out_dtype = x.dtype
    mxu_itemsize = jnp.dtype(mxu_dtype).itemsize
    out_itemsize = jnp.dtype(out_dtype).itemsize

    # --- wrapper-side layout prep: transpose to (in, out), zero-pad feature dims to 128 ---
    # Zero padding is exact: padded rows/cols contribute 0 to every dot product, and padded
    # activation lanes are killed by the next layer's zero weight rows; output is sliced below.
    w_p, b_p = [], []
    for li, (w, b) in enumerate(zip(weights, biases)):
        wt = jnp.asarray(w, jnp.float32).T                                  # (in, out)
        wt = jnp.pad(wt, ((0, dims_pad[li] - dims[li]),
                          (0, dims_pad[li + 1] - dims[li + 1])))
        w_p.append(wt.astype(mxu_dtype))
        bb = jnp.pad(jnp.asarray(b, jnp.float32), (0, dims_pad[li + 1] - dims[li + 1]))
        b_p.append(bb.reshape(1, -1))                                       # (1, out_pad) f32

    weight_bytes = (sum(w.size * w.dtype.itemsize for w in w_p)
                    + sum(b.size * b.dtype.itemsize for b in b_p))

    # --- generation-aware VMEM budget ---
    vmem_cap, num_cores = _tpu_vmem_and_cores()
    if vmem_cap >= 128 * 1024 * 1024:
        vmem_ceiling = 100 * 1024 * 1024        # v5e/v6e: 128 MiB physical VMEM
    else:
        vmem_ceiling = min(52 * 1024 * 1024,    # v7x: 64 MiB per TC, leave scratch headroom
                           max(vmem_cap - 12 * 1024 * 1024, 16 * 1024 * 1024))

    single_buffer_weights = hasattr(pl, "Buffered")
    weight_resident = weight_bytes * (1 if single_buffer_weights else 2)
    if weight_resident > 0.6 * vmem_ceiling:
        # TODO(synk): stream stacked hidden-layer weights over a second ('arbitrary') grid axis
        # with a VMEM activation accumulator instead of keeping every layer resident.
        raise ValueError(
            f"all-resident weights ({weight_resident} B) exceed the per-core VMEM budget "
            f"({vmem_ceiling} B); weight streaming is not implemented for this size")

    # --- auto-size the batch tile: biggest sublane-multiple tile fitting the VMEM budget ---
    b_pad8 = _round_up(B, _SUBLANE)
    per_row = (2 * dims_pad[0] * mxu_itemsize          # x block, double-buffered
               + 2 * dims_pad[-1] * out_itemsize       # out block, double-buffered
               + 3 * max(dims_pad) * 4)                # live f32 / mxu-dtype intermediates
    if batch_tile is None:
        avail = vmem_ceiling - weight_resident - 8 * 1024 * 1024
        batch_tile = max(_SUBLANE, min(_MAX_BATCH_TILE, avail // max(per_row, 1)))
    tb = max(_SUBLANE, (int(batch_tile) // _SUBLANE) * _SUBLANE)
    tb = min(tb, b_pad8)
    # Split into >= 2 grid tiles only when >= 2 TensorCores can share the grid (v7x megacore);
    # on single-TC v5e/v6e the grid is a serial loop and splitting only adds per-step overhead.
    if num_cores >= 2 and b_pad8 // tb < 2 and b_pad8 >= 2 * _SUBLANE:
        tb = _round_up(b_pad8 // 2, _SUBLANE)
    B_pad = _round_up(B, tb)
    grid = (B_pad // tb,)

    # Cast x to the MXU dtype in the wrapper: halves the per-tile x DMA bytes and removes the
    # in-kernel double cast.
    x_pad = jnp.pad(x, ((0, B_pad - B), (0, dims_pad[0] - in_dim))).astype(mxu_dtype)

    # --- scheduler hints: cost estimate + explicit, generation-aware VMEM limit ---
    flops = 2 * B_pad * sum(dims_pad[l] * dims_pad[l + 1] for l in range(num_layers))
    transcendentals = B_pad * sum(dims_pad[1:-1])       # one activation per hidden unit
    bytes_accessed = (x_pad.size * x_pad.dtype.itemsize + weight_bytes
                      + B_pad * dims_pad[-1] * out_itemsize)
    cost = pl.CostEstimate(flops=flops, transcendentals=transcendentals,
                           bytes_accessed=bytes_accessed)

    vmem_est = tb * per_row + weight_resident
    vmem_limit = int(min(max(2 * vmem_est, 16 * 1024 * 1024), vmem_ceiling))

    kernel = functools.partial(_mlp_kernel, num_layers, act_fn, mxu_dtype)

    def _call(weight_spec_kwargs):
        in_specs = [pl.BlockSpec((tb, dims_pad[0]), lambda i: (i, 0))]
        operands = [x_pad]
        for w, b in zip(w_p, b_p):
            in_specs.append(pl.BlockSpec(w.shape, lambda i: (0, 0), **weight_spec_kwargs))
            in_specs.append(pl.BlockSpec(b.shape, lambda i: (0, 0), **weight_spec_kwargs))
            operands.append(w)
            operands.append(b)
        return pl.pallas_call(
            kernel,
            out_shape=jax.ShapeDtypeStruct((B_pad, dims_pad[-1]), out_dtype),
            grid_spec=pltpu.PrefetchScalarGridSpec(
                num_scalar_prefetch=0,
                grid=grid,
                in_specs=in_specs,
                out_specs=pl.BlockSpec((tb, dims_pad[-1]), lambda i: (i, 0)),
            ),
            compiler_params=pltpu.CompilerParams(
                dimension_semantics=("parallel",),
                vmem_limit_bytes=vmem_limit,
            ),
            cost_estimate=cost,
        )(*operands)

    if single_buffer_weights:
        try:
            # Weights/biases are grid-invariant -> single-buffer them (halves weight VMEM).
            out = _call({"pipeline_mode": pl.Buffered(1)})
        except Exception as err:
            # Narrow fallback: only retry (with default double-buffering) if the failure is
            # specifically about the single-buffer pipeline mode; everything else re-raises.
            msg = str(err).lower()
            if ("pipeline" not in msg) and ("buffered" not in msg) and ("buffer_count" not in msg):
                raise
            out = _call({})
    else:
        out = _call({})

    return out[:B, :out_dim]


def _init_linear(key, out_features, in_features):
    """Deterministic PyTorch-style init: U(-1/sqrt(fan_in), 1/sqrt(fan_in))."""
    kw, kb = jax.random.split(key)
    bound = 1.0 / (in_features ** 0.5)
    w = jax.random.uniform(kw, (out_features, in_features), jnp.float32, -bound, bound)
    b = jax.random.uniform(kb, (out_features,), jnp.float32, -bound, bound)
    return w, b


if __name__ == "__main__":
    # Module config (small, consistent with FeedforwardNN.__init__):
    input_dim = 16
    output_dim = 4
    hidden_layers = 2
    hidden_units = 32
    batch = 32

    key = jax.random.PRNGKey(0)
    dims = [input_dim] + [hidden_units] * hidden_layers + [output_dim]
    keys = jax.random.split(key, len(dims))   # len(dims)-1 layer keys + 1 for x

    weights, biases = [], []
    for li in range(len(dims) - 1):
        w, b = _init_linear(keys[li], dims[li + 1], dims[li])
        weights.append(w)
        biases.append(b)
    x = jax.random.normal(keys[-1], (batch, input_dim), jnp.float32)

    # Pure-JAX reference (same semantics as the PyTorch forward), highest-precision matmuls.
    ref = x
    for li in range(len(weights)):
        ref = jnp.dot(ref, weights[li].T, precision=jax.lax.Precision.HIGHEST) + biases[li]
        if li < len(weights) - 1:
            ref = jnp.tanh(ref)

    # f32-operand MXU path: tighter numerics check of the fused structure.
    out_f32 = jax.block_until_ready(
        feedforward_nn(x, weights, biases, "tanh", mxu_dtype=jnp.float32))
    assert out_f32.shape == (batch, output_dim)
    assert jnp.allclose(out_f32, ref, atol=5e-2, rtol=5e-2), "f32 path mismatch vs reference"

    # bf16-operand MXU path (default fast path on v5e/v6e/v7x): f32 accumulate, looser tol.
    out_bf16 = jax.block_until_ready(feedforward_nn(x, weights, biases, "tanh"))
    assert out_bf16.shape == (batch, output_dim)
    assert bool(jnp.all(jnp.isfinite(out_bf16)))
    assert jnp.allclose(out_bf16, ref, atol=1.5e-1, rtol=1.5e-1), "bf16 path mismatch vs reference"

    print("KERNEL_OK")
</pallas_src>

<mosaic_0001>
module attributes {stable_mosaic.version = 11 : i64} {
  func.func @_mlp_kernel(%arg0: i32, %arg1: memref<32x128xf32, #tpu.memory_space<vmem>>, %arg2: memref<128x128xf32, #tpu.memory_space<vmem>>, %arg3: memref<1x128xf32, #tpu.memory_space<vmem>>, %arg4: memref<128x128xf32, #tpu.memory_space<vmem>>, %arg5: memref<1x128xf32, #tpu.memory_space<vmem>>, %arg6: memref<128x128xf32, #tpu.memory_space<vmem>>, %arg7: memref<1x128xf32, #tpu.memory_space<vmem>>, %arg8: memref<32x128xf32, #tpu.memory_space<vmem>>) attributes {dimension_semantics = [#tpu.dimension_semantics<parallel>], iteration_bounds = array<i64: 1>, scalar_prefetch = 0 : i64, scratch_operands = 0 : i64, tpu.core_type = #tpu.core_type<tc>, window_params = [{transform_indices = @transform_0, window_bounds = array<i64: 32, 128>}, {pipeline_mode = #tpu.pipeline_mode<synchronous>, transform_indices = @transform_1, window_bounds = array<i64: 128, 128>}, {pipeline_mode = #tpu.pipeline_mode<synchronous>, transform_indices = @transform_2, window_bounds = array<i64: 1, 128>}, {pipeline_mode = #tpu.pipeline_mode<synchronous>, transform_indices = @transform_3, window_bounds = array<i64: 128, 128>}, {pipeline_mode = #tpu.pipeline_mode<synchronous>, transform_indices = @transform_4, window_bounds = array<i64: 1, 128>}, {pipeline_mode = #tpu.pipeline_mode<synchronous>, transform_indices = @transform_5, window_bounds = array<i64: 128, 128>}, {pipeline_mode = #tpu.pipeline_mode<synchronous>, transform_indices = @transform_6, window_bounds = array<i64: 1, 128>}, {transform_indices = @transform_7, window_bounds = array<i64: 32, 128>}]} {
    %c0 = arith.constant 0 : index
    %c0_0 = arith.constant 0 : index
    %0 = vector.load %arg1[%c0, %c0_0] : memref<32x128xf32, #tpu.memory_space<vmem>>, vector<32x128xf32>
    %c0_1 = arith.constant 0 : index
    %c0_2 = arith.constant 0 : index
    %1 = vector.load %arg2[%c0_1, %c0_2] : memref<128x128xf32, #tpu.memory_space<vmem>>, vector<128x128xf32>
    %c0_3 = arith.constant 0 : index
    %c0_4 = arith.constant 0 : index
    %2 = vector.load %arg3[%c0_3, %c0_4] : memref<1x128xf32, #tpu.memory_space<vmem>>, vector<1x128xf32>
    %cst = arith.constant dense<0.000000e+00> : vector<32x128xf32>
    %3 = tpu.matmul %0, %1, %cst {dimension_numbers = #tpu.dot_dimension_numbers<[1], [0], [0], [1], [0, 0, 1, 1], [], []>} : vector<32x128xf32>, vector<128x128xf32>, vector<32x128xf32> -> vector<32x128xf32>
    %4 = vector.broadcast %2 : vector<1x128xf32> to vector<32x128xf32>
    %5 = arith.addf %3, %4 : vector<32x128xf32>
    %6 = math.tanh %5 : vector<32x128xf32>
    %c0_5 = arith.constant 0 : index
    %c0_6 = arith.constant 0 : index
    %7 = vector.load %arg4[%c0_5, %c0_6] : memref<128x128xf32, #tpu.memory_space<vmem>>, vector<128x128xf32>
    %c0_7 = arith.constant 0 : index
    %c0_8 = arith.constant 0 : index
    %8 = vector.load %arg5[%c0_7, %c0_8] : memref<1x128xf32, #tpu.memory_space<vmem>>, vector<1x128xf32>
    %cst_9 = arith.constant dense<0.000000e+00> : vector<32x128xf32>
    %9 = tpu.matmul %6, %7, %cst_9 {dimension_numbers = #tpu.dot_dimension_numbers<[1], [0], [0], [1], [0, 0, 1, 1], [], []>} : vector<32x128xf32>, vector<128x128xf32>, vector<32x128xf32> -> vector<32x128xf32>
    %10 = vector.broadcast %8 : vector<1x128xf32> to vector<32x128xf32>
    %11 = arith.addf %9, %10 : vector<32x128xf32>
    %12 = math.tanh %11 : vector<32x128xf32>
    %c0_10 = arith.constant 0 : index
    %c0_11 = arith.constant 0 : index
    %13 = vector.load %arg6[%c0_10, %c0_11] : memref<128x128xf32, #tpu.memory_space<vmem>>, vector<128x128xf32>
    %c0_12 = arith.constant 0 : index
    %c0_13 = arith.constant 0 : index
    %14 = vector.load %arg7[%c0_12, %c0_13] : memref<1x128xf32, #tpu.memory_space<vmem>>, vector<1x128xf32>
    %cst_14 = arith.constant dense<0.000000e+00> : vector<32x128xf32>
    %15 = tpu.matmul %12, %13, %cst_14 {dimension_numbers = #tpu.dot_dimension_numbers<[1], [0], [0], [1], [0, 0, 1, 1], [], []>} : vector<32x128xf32>, vector<128x128xf32>, vector<32x128xf32> -> vector<32x128xf32>
    %16 = vector.broadcast %14 : vector<1x128xf32> to vector<32x128xf32>
    %17 = arith.addf %15, %16 : vector<32x128xf32>
    %c0_15 = arith.constant 0 : index
    %c0_16 = arith.constant 0 : index
    %18 = vector.load %arg8[%c0_15, %c0_16] : memref<32x128xf32, #tpu.memory_space<vmem>>, vector<32x128xf32>
    tpu.vector_store %arg8[%c0_15, %c0_16], %17 {strides = array<i32>} : memref<32x128xf32, #tpu.memory_space<vmem>>, vector<32x128xf32>,
    return
  }
  func.func @transform_0(%arg0: i32) -> (i32, i32) {
    %c0_i32 = arith.constant 0 : i32
    %c0_i32_0 = arith.constant 0 : i32
    return %arg0, %c0_i32 : i32, i32
  }
  func.func @transform_1(%arg0: i32) -> (i32, i32) {
    %c0_i32 = arith.constant 0 : i32
    %c0_i32_0 = arith.constant 0 : i32
    %c0_i32_1 = arith.constant 0 : i32
    return %c0_i32, %c0_i32_0 : i32, i32
  }
  func.func @transform_2(%arg0: i32) -> (i32, i32) {
    %c0_i32 = arith.constant 0 : i32
    %c0_i32_0 = arith.constant 0 : i32
    %c0_i32_1 = arith.constant 0 : i32
    return %c0_i32, %c0_i32_0 : i32, i32
  }
  func.func @transform_3(%arg0: i32) -> (i32, i32) {
    %c0_i32 = arith.constant 0 : i32
    %c0_i32_0 = arith.constant 0 : i32
    %c0_i32_1 = arith.constant 0 : i32
    return %c0_i32, %c0_i32_0 : i32, i32
  }
  func.func @transform_4(%arg0: i32) -> (i32, i32) {
    %c0_i32 = arith.constant 0 : i32
    %c0_i32_0 = arith.constant 0 : i32
    %c0_i32_1 = arith.constant 0 : i32
    return %c0_i32, %c0_i32_0 : i32, i32
  }
  func.func @transform_5(%arg0: i32) -> (i32, i32) {
    %c0_i32 = arith.constant 0 : i32
    %c0_i32_0 = arith.constant 0 : i32
    %c0_i32_1 = arith.constant 0 : i32
    return %c0_i32, %c0_i32_0 : i32, i32
  }
  func.func @transform_6(%arg0: i32) -> (i32, i32) {
    %c0_i32 = arith.constant 0 : i32
    %c0_i32_0 = arith.constant 0 : i32
    %c0_i32_1 = arith.constant 0 : i32
    return %c0_i32, %c0_i32_0 : i32, i32
  }
  func.func @transform_7(%arg0: i32) -> (i32, i32) {
    %c0_i32 = arith.constant 0 : i32
    %c0_i32_0 = arith.constant 0 : i32
    return %arg0, %c0_i32 : i32, i32
  }
}

</mosaic_0001>

<bundles_post_ra>
// kernel: tpu_custom_call.1
= control target key start
LH: loop header
LB: loop body
LE: loop exit
PB: predicated region body
PF: predicated region fallthrough
CT: control target
= control target key end

     0   :  { %12 = vsyncpa [#allocation3], 0  ;;  %s867_s0 = inlined_call_operand.hbm [shape: f32[32,128], index: 0, kind: input, shape index: {}]   ;;  %s868_s1 = inlined_call_operand.hbm [shape: f32[128,128], index: 1, kind: input, shape index: {}]   ;;  %s869_s2 = inlined_call_operand.vmem [shape: f32[1,128], index: 2, kind: input, shape index: {}]   ;;  %s870_s3 = inlined_call_operand.hbm [shape: f32[128,128], index: 3, kind: input, shape index: {}]   ;;  %s871_s4 = inlined_call_operand.vmem [shape: f32[1,128], index: 4, kind: input, shape index: {}]   ;;  %s872_s5 = inlined_call_operand.hbm [shape: f32[128,128], index: 5, kind: input, shape index: {}]   ;;  %s873_s6 = inlined_call_operand.vmem [shape: f32[1,128], index: 6, kind: input, shape index: {}]   ;;  %s874_s7 = inlined_call_operand.hbm [shape: f32[32,128], index: 7, kind: output, shape index: {}]  }
   0x1   :  { %13 = vsyncpa [#allocation6], 0 }
   0x2   :  { %14 = vsyncpa [#allocation9], 0 }
   0x3   :  { %15 = vsyncpa [#allocation4], 0  ;;  %s781_s24 = smov [#allocation5]   ;;  %s782_s26 = smov [#allocation2]  }
   0x4   :  { %s33_s25 = sshll.u32 %s781_s24, 4  ;;  %s21_s27 = sshll.u32 %s782_s26, 4  ;;  %s34_s25 = int_to_ptr.vmem [resolvable:$true] %s33_s25  ;;  %s22_s27 = int_to_ptr.vmem [resolvable:$true] %s21_s27 }
   0x5   :  { %s681_s28 = scalar_lea.vmem %s34_s25, 2048  ;;  %p686_p1 = scmp.lt.s32.totalorder %s34_s25, %s34_s25 }
   0x6   :  { %p682_p0 = scmp.ne.s32.totalorder %s34_s25, %s681_s28  ;;  %p687_p2 = scmp.lt.s32.totalorder %s681_s28, %s681_s28 }
   0x8   :  { %p688_p3 = por %p687_p2, %p686_p1 }
   0xa   :  { %p689_p4 = pnand %p688_p3, %p682_p0 }
   0xc   :  { %692 = shalt.err (!%p689_p4)
}
   0xd   :  { %s783_s29 = smov 128   ;;  %s784_s30 = smov 8  }
   0xe   :  { %39 = dma.hbm_to_vmem [thread:$0]  %s868_s1, 2048, %s34_s25, [#allocation6], %s783_s29, %s783_s29, %s784_s30  }
   0xf   :  { %s701_s10 = scalar_lea.vmem %s22_s27, 512  ;;  %p706_p6 = scmp.lt.s32.totalorder %s22_s27, %s22_s27 }
  0x10   :  { %p702_p5 = scmp.ne.s32.totalorder %s22_s27, %s701_s10  ;;  %p707_p7 = scmp.lt.s32.totalorder %s701_s10, %s701_s10 }
  0x12   :  { %p708_p8 = por %p707_p7, %p706_p6 }
  0x14   :  { %p709_p9 = pnand %p708_p8, %p702_p5 }
  0x16   :  { %712 = shalt.err (!%p709_p9)
}
  0x17   :  { %27 = dma.hbm_to_vmem [thread:$0]  %s867_s0, 512, %s22_s27, [#allocation3], %s783_s29, %s783_s29, %s784_s30  }
  0x18   :  { %s785_s13 = smov [#allocation7]   ;;  %s786_s15 = smov [#allocation8]  }
  0x19   :  { %s47_s14 = sshll.u32 %s785_s13, 4  ;;  %s61_s16 = sshll.u32 %s786_s15, 4  ;;  %s48_s14 = int_to_ptr.vmem [resolvable:$true] %s47_s14  ;;  %s62_s16 = int_to_ptr.vmem [resolvable:$true] %s61_s16 }
  0x1a   :  { %s721_s1 = scalar_lea.vmem %s48_s14, 2048  ;;  %p726_p11 = scmp.lt.s32.totalorder %s48_s14, %s48_s14 }
  0x1b   :  { %p722_p10 = scmp.ne.s32.totalorder %s48_s14, %s721_s1  ;;  %p727_p12 = scmp.lt.s32.totalorder %s721_s1, %s721_s1 }
  0x1d   :  { %p728_p13 = por %p727_p12, %p726_p11 }
  0x1f   :  { %p729_p0 = pnand %p728_p13, %p722_p10 }
  0x21   :  { %732 = shalt.err (!%p729_p0)
}
  0x22   :  { %53 = dma.hbm_to_vmem [thread:$0]  %s870_s3, 2048, %s48_s14, [#allocation6], %s783_s29, %s783_s29, %s784_s30  }
  0x23   :  { %s741_s0 = scalar_lea.vmem %s62_s16, 2048  ;;  %p746_p2 = scmp.lt.s32.totalorder %s62_s16, %s62_s16 }
  0x24   :  { %p742_p1 = scmp.ne.s32.totalorder %s62_s16, %s741_s0  ;;  %p747_p3 = scmp.lt.s32.totalorder %s741_s0, %s741_s0 }
  0x26   :  { %p748_p4 = por %p747_p3, %p746_p2 }
  0x28   :  { %p749_p5 = pnand %p748_p4, %p742_p1 }
  0x2a   :  { %752 = shalt.err (!%p749_p5)
}
  0x2b   :  { %67 = dma.hbm_to_vmem [thread:$0]  %s872_s5, 2048, %s62_s16, [#allocation9], %s783_s29, %s783_s29, %s784_s30  }
  0x2c   :  { %773 = dma.done.wait [#allocation3], 512  }
  0x2d   :  { %774 = vsyncadd [#allocation3], 4294966784 }
  0x2e   :  { %775 = dma.done.wait [#allocation6], 4096  }
  0x2f   :  { %776 = vsyncadd [#allocation6], 4294963200 }
  0x30   :  { %777 = dma.done.wait [#allocation9], 2048  }
  0x31   :  { %778 = vsyncadd [#allocation9], 4294965248  ;;  %v101_v0 = vld [vmem:[#allocation5 + $0x78] sm:$0xff]  ;;  %v100_v1 = vld [vmem:[#allocation5 + $0x70] sm:$0xff]  ;;  %s787_s23 = smov [#allocation10]  }
  0x32   :  { %504 = vmatprep.subr.mxu0 %v101_v0  ;;  %v99_v2 = vld [vmem:[#allocation5 + $0x68] sm:$0xff]  ;;  %v98_v3 = vld [vmem:[#allocation5 + $0x60] sm:$0xff]  ;;  %v97_v5 = vld [vmem:[#allocation5 + $0x58] sm:$0xff]  ;;  %s427_s24 = sshll.u32 %s787_s23, 4  ;;  %s428_s24 = int_to_ptr.vmem [resolvable:$true] %s427_s24 }
  0x33   :  { %505 = vmatpush3.msra.mxu0 %v101_v0  ;;  %v82_v4 = vld [vmem:[#allocation2] sm:$0xff]  ;;  %v213_v6 = vld [vmem:[#allocation7 + $0x78] sm:$0xff]  ;;  %v212_v7 = vld [vmem:[#allocation7 + $0x70] sm:$0xff]  ;;  %s753_s25 = scalar_lea.vmem %s428_s24, 512  ;;  %p758_p7 = scmp.lt.s32.totalorder %s428_s24, %s428_s24 }
  0x34   :  { %506 = vmatprep.subr.mxu0 %v100_v1  ;;  %536 = vmatprep.mubr.f32.mxu0 %v82_v4  ;;  %v96_v8 = vld [vmem:[#allocation5 + $0x50] sm:$0xff]  ;;  %v211_v9 = vld [vmem:[#allocation7 + $0x68] sm:$0xff]  ;;  %v210_v11 = vld [vmem:[#allocation7 + $0x60] sm:$0xff]  ;;  %p754_p6 = scmp.ne.s32.totalorder %s428_s24, %s753_s25  ;;  %p759_p8 = scmp.lt.s32.totalorder %s753_s25, %s753_s25 }
  0x35   :  { %507 = vmatpush3.msra.mxu0 %v100_v1  ;;  %542 = vmatprep.subr.mxu1 %v213_v6  ;;  %v95_v10 = vld [vmem:[#allocation5 + $0x48] sm:$0xff]  ;;  %v94_v12 = vld [vmem:[#allocation5 + $0x40] sm:$0xff]  ;;  %v209_v13 = vld [vmem:[#allocation7 + $0x58] sm:$0xff] }
  0x36   :  { %508 = vmatprep.subr.mxu0 %v99_v2  ;;  %543 = vmatpush3.msra.mxu1 %v213_v6  ;;  %v93_v14 = vld [vmem:[#allocation5 + $0x38] sm:$0xff]  ;;  %v208_v15 = vld [vmem:[#allocation7 + $0x50] sm:$0xff]  ;;  %v91_v17 = vld [vmem:[#allocation5 + $0x28] sm:$0xff]  ;;  %p760_p9 = por %p759_p8, %p758_p7 }
  0x37   :  { %509 = vmatpush3.msra.mxu0 %v99_v2  ;;  %544 = vmatprep.subr.mxu1 %v212_v7  ;;  %v92_v16 = vld [vmem:[#allocation5 + $0x30] sm:$0xff]  ;;  %v90_v18 = vld [vmem:[#allocation5 + $0x20] sm:$0xff]  ;;  %v89_v19 = vld [vmem:[#allocation5 + $0x18] sm:$0xff] }
  0x38   :  { %510 = vmatprep.subr.mxu0 %v98_v3  ;;  %545 = vmatpush3.msra.mxu1 %v212_v7  ;;  %v88_v20 = vld [vmem:[#allocation5 + $0x10] sm:$0xff]  ;;  %v87_v21 = vld [vmem:[#allocation5 + $0x8] sm:$0xff]  ;;  %v86_v22 = vld [vmem:[#allocation5] sm:$0xff]  ;;  %p761_p10 = pnand %p760_p9, %p754_p6 }
  0x39   :  { %511 = vmatpush3.msra.mxu0 %v98_v3  ;;  %546 = vmatprep.subr.mxu1 %v211_v9  ;;  %v83_v23 = vld [vmem:[#allocation2 + $0x8] sm:$0xff]  ;;  %v84_v24 = vld [vmem:[#allocation2 + $0x10] sm:$0xff]  ;;  %v85_v25 = vld [vmem:[#allocation2 + $0x18] sm:$0xff] }
  0x3a   :  { %512 = vmatprep.subr.mxu0 %v97_v5  ;;  %547 = vmatpush3.msra.mxu1 %v211_v9  ;;  %v207_v26 = vld [vmem:[#allocation7 + $0x48] sm:$0xff]  ;;  %v206_v27 = vld [vmem:[#allocation7 + $0x40] sm:$0xff]  ;;  %v205_v28 = vld [vmem:[#allocation7 + $0x38] sm:$0xff] }
  0x3b   :  { %513 = vmatpush3.msra.mxu0 %v97_v5  ;;  %548 = vmatprep.subr.mxu1 %v210_v11  ;;  %v204_v29 = vld [vmem:[#allocation7 + $0x30] sm:$0xff]  ;;  %v203_v30 = vld [vmem:[#allocation7 + $0x28] sm:$0xff]  ;;  %v202_v31 = vld [vmem:[#allocation7 + $0x20] sm:$0xff] }
  0x3c   :  { %514 = vmatprep.subr.mxu0 %v96_v8  ;;  %549 = vmatpush3.msra.mxu1 %v210_v11  ;;  %v201_v32 = vld [vmem:[#allocation7 + $0x18] sm:$0xff]  ;;  %v200_v33 = vld [vmem:[#allocation7 + $0x10] sm:$0xff]  ;;  %v199_v34 = vld [vmem:[#allocation7 + $0x8] sm:$0xff] }
  0x3d   :  { %515 = vmatpush3.msra.mxu0 %v96_v8  ;;  %550 = vmatprep.subr.mxu1 %v209_v13  ;;  %v198_v35 = vld [vmem:[#allocation7] sm:$0xff]  ;;  %v325_v36 = vld [vmem:[#allocation8 + $0x78] sm:$0xff]  ;;  %v324_v37 = vld [vmem:[#allocation8 + $0x70] sm:$0xff] }
  0x3e   :  { %516 = vmatprep.subr.mxu0 %v95_v10  ;;  %551 = vmatpush3.msra.mxu1 %v209_v13  ;;  %v323_v38 = vld [vmem:[#allocation8 + $0x68] sm:$0xff]  ;;  %v322_v39 = vld [vmem:[#allocation8 + $0x60] sm:$0xff]  ;;  %v321_v40 = vld [vmem:[#allocation8 + $0x58] sm:$0xff] }
  0x3f   :  { %517 = vmatpush3.msra.mxu0 %v95_v10  ;;  %552 = vmatprep.subr.mxu1 %v208_v15  ;;  %v320_v41 = vld [vmem:[#allocation8 + $0x50] sm:$0xff]  ;;  %v441_v42 = vld [vmem:[%s869_s2] ss:$0 sm:$0xff]  ;;  %v319_v55 = vld [vmem:[#allocation8 + $0x48] sm:$0xff] }
  0x40   :  { %518 = vmatprep.subr.mxu0 %v94_v12  ;;  %553 = vmatpush3.msra.mxu1 %v208_v15  ;;  %v318_v56 = vld [vmem:[#allocation8 + $0x40] sm:$0xff]  ;;  %v317_v57 = vld [vmem:[#allocation8 + $0x38] sm:$0xff]  ;;  %v316_v58 = vld [vmem:[#allocation8 + $0x30] sm:$0xff] }
  0x41   :  { %519 = vmatpush3.msra.mxu0 %v94_v12  ;;  %554 = vmatprep.subr.mxu1 %v207_v26  ;;  %v315_v59 = vld [vmem:[#allocation8 + $0x28] sm:$0xff]  ;;  %v314_v60 = vld [vmem:[#allocation8 + $0x20] sm:$0xff]  ;;  %v313_v61 = vld [vmem:[#allocation8 + $0x18] sm:$0xff] }
  0x42   :  { %520 = vmatprep.subr.mxu0 %v93_v14  ;;  %555 = vmatpush3.msra.mxu1 %v207_v26  ;;  %v312_v62 = vld [vmem:[#allocation8 + $0x10] sm:$0xff]  ;;  %v311_v63 = vld [vmem:[#allocation8 + $0x8] sm:$0xff]  ;;  %v310_v0 = vld [vmem:[#allocation8] sm:$0xff] }
  0x43   :  { %521 = vmatpush3.msra.mxu0 %v93_v14  ;;  %556 = vmatprep.subr.mxu1 %v206_v27  ;;  %v442_v1 = vld [vmem:[%s871_s4] ss:$0 sm:$0xff] }
  0x44   :  { %522 = vmatprep.subr.mxu0 %v92_v16  ;;  %557 = vmatpush3.msra.mxu1 %v206_v27  ;;  %v443_v14 = vld [vmem:[%s873_s6] ss:$0 sm:$0xff] }
  0x45   :  { %523 = vmatpush3.msra.mxu0 %v92_v16  ;;  %558 = vmatprep.subr.mxu1 %v205_v28 }
  0x46   :  { %524 = vmatprep.subr.mxu0 %v91_v17  ;;  %559 = vmatpush3.msra.mxu1 %v205_v28 }
  0x47   :  { %525 = vmatpush3.msra.mxu0 %v91_v17  ;;  %560 = vmatprep.subr.mxu1 %v204_v29 }
  0x48   :  { %526 = vmatprep.subr.mxu0 %v90_v18  ;;  %561 = vmatpush3.msra.mxu1 %v204_v29 }
  0x49   :  { %527 = vmatpush3.msra.mxu0 %v90_v18  ;;  %562 = vmatprep.subr.mxu1 %v203_v30 }
  0x4a   :  { %528 = vmatprep.subr.mxu0 %v89_v19  ;;  %563 = vmatpush3.msra.mxu1 %v203_v30 }
  0x4b   :  { %529 = vmatpush3.msra.mxu0 %v89_v19  ;;  %564 = vmatprep.subr.mxu1 %v202_v31 }
  0x4c   :  { %530 = vmatprep.subr.mxu0 %v88_v20  ;;  %565 = vmatpush3.msra.mxu1 %v202_v31 }
  0x4d   :  { %531 = vmatpush3.msra.mxu0 %v88_v20  ;;  %566 = vmatprep.subr.mxu1 %v201_v32 }
  0x4e   :  { %532 = vmatprep.subr.mxu0 %v87_v21  ;;  %567 = vmatpush3.msra.mxu1 %v201_v32 }
  0x4f   :  { %533 = vmatpush3.msra.mxu0 %v87_v21  ;;  %568 = vmatprep.subr.mxu1 %v200_v33 }
  0x50   :  { %534 = vmatprep.subr.mxu0 %v86_v22  ;;  %569 = vmatpush3.msra.mxu1 %v200_v33 }
  0x51   :  { %535 = vmatpush3.msra.mxu0 %v86_v22  ;;  %570 = vmatprep.subr.mxu1 %v199_v34 }
  0x52   :  { %537 = vmatmul.mubr.f32.vlgmr.msra.gmra.mxu0 %v83_v23  ;;  %571 = vmatpush3.msra.mxu1 %v199_v34 }
  0x53   :  { %539 = vmatprep.mubr.f32.mxu0 %v84_v24  ;;  %572 = vmatprep.subr.mxu1 %v198_v35 }
  0x54   :  { %573 = vmatpush3.msra.mxu1 %v198_v35  ;;  %580 = vmatprep.subr.mxu0 %v325_v36 }
  0x55   :  { %618 = vmatprep.subr.mxu1 %v325_v36  ;;  %581 = vmatpush3.msra.mxu0 %v325_v36 }
  0x56   :  { %540 = vmatmul.mubr.f32.gmra.mxu0 %v85_v25  ;;  %582 = vmatprep.subr.mxu0 %v324_v37 }
  0x57   :  { %583 = vmatpush3.msra.mxu0 %v324_v37 }
  0x58   :  { %584 = vmatprep.subr.mxu0 %v323_v38 }
  0x59   :  { %585 = vmatpush3.msra.mxu0 %v323_v38 }
  0x5a   :  { %586 = vmatprep.subr.mxu0 %v322_v39 }
  0x5b   :  { %587 = vmatpush3.msra.mxu0 %v322_v39 }
  0x5c   :  { %588 = vmatprep.subr.mxu0 %v321_v40 }
  0x5d   :  { %589 = vmatpush3.msra.mxu0 %v321_v40 }
  0x5e   :  { %590 = vmatprep.subr.mxu0 %v320_v41 }
  0x5f   :  { %591 = vmatpush3.msra.mxu0 %v320_v41 }
  0x60   :  { %592 = vmatprep.subr.mxu0 %v319_v55 }
  0x61   :  { %593 = vmatpush3.msra.mxu0 %v319_v55 }
  0x62   :  { %594 = vmatprep.subr.mxu0 %v318_v56 }
  0x63   :  { %595 = vmatpush3.msra.mxu0 %v318_v56 }
  0x64   :  { %596 = vmatprep.subr.mxu0 %v317_v57 }
  0x65   :  { %597 = vmatpush3.msra.mxu0 %v317_v57 }
  0x66   :  { %598 = vmatprep.subr.mxu0 %v316_v58 }
  0x67   :  { %599 = vmatpush3.msra.mxu0 %v316_v58 }
  0x68   :  { %600 = vmatprep.subr.mxu0 %v315_v59 }
  0x69   :  { %601 = vmatpush3.msra.mxu0 %v315_v59 }
  0x6a   :  { %602 = vmatprep.subr.mxu0 %v314_v60 }
  0x6b   :  { %603 = vmatpush3.msra.mxu0 %v314_v60 }
  0x6c   :  { %604 = vmatprep.subr.mxu0 %v313_v61 }
  0x6d   :  { %605 = vmatpush3.msra.mxu0 %v313_v61 }
  0x6e   :  { %606 = vmatprep.subr.mxu0 %v312_v62 }
  0x6f   :  { %607 = vmatpush3.msra.mxu0 %v312_v62 }
  0x70   :  { %608 = vmatprep.subr.mxu0 %v311_v63 }
  0x71   :  { %609 = vmatpush3.msra.mxu0 %v311_v63 }
  0x72   :  { %610 = vmatprep.subr.mxu0 %v310_v0 }
  0x73   :  { %611 = vmatpush3.msra.mxu0 %v310_v0 }
 0x112   :  { %v538_v43 = vpop.f32.mrf.mxu0 }
 0x113   :  { %v181_v44 = vadd.f32 %v538_v43, %v441_v42 }
 0x114   :  { %v175_v45 = vpop.f32.mrf.mxu0 }
 0x115   :  { %v176_v46 = vadd.f32 %v441_v42, %v175_v45 }
 0x116   :  { %v541_v47 = vpop.f32.mrf.mxu0 }
 0x117   :  { %657 = vtanh.f32 %v176_v46  ;;  %v191_v48 = vadd.f32 %v541_v47, %v441_v42 }
 0x118   :  { %659 = vtanh.f32 %v181_v44  ;;  %v185_v49 = vpop.f32.mrf.mxu0 }
 0x119   :  { %v186_v50 = vadd.f32 %v441_v42, %v185_v49 }
 0x11b   :  { %661 = vtanh.f32 %v186_v50 }
 0x11c   :  { %663 = vtanh.f32 %v191_v48 }
 0x124   :  { %v658_v51 = vpop.eup %657 }
 0x125   :  { %v660_v52 = vpop.eup %659  ;;  %574 = vmatprep.mubr.f32.mxu1 %v658_v51 }
 0x126   :  { %575 = vmatmul.mubr.f32.vlgmr.msra.gmra.mxu1 %v660_v52 }
 0x127   :  { %634 = vmatpush3.msra.mxu1 %v325_v36 }
 0x128   :  { %v662_v53 = vpop.eup %661  ;;  %619 = vmatprep.subr.mxu1 %v324_v37 }
 0x129   :  { %v664_v54 = vpop.eup %663  ;;  %577 = vmatprep.mubr.f32.mxu1 %v662_v53  ;;  %635 = vmatpush3.msra.mxu1 %v324_v37 }
 0x12a   :  { %578 = vmatmul.mubr.f32.gmra.mxu1 %v664_v54  ;;  %620 = vmatprep.subr.mxu1 %v323_v38 }
 0x12b   :  { %636 = vmatpush3.msra.mxu1 %v323_v38 }
 0x12c   :  { %621 = vmatprep.subr.mxu1 %v322_v39 }
 0x12d   :  { %637 = vmatpush3.msra.mxu1 %v322_v39 }
 0x12e   :  { %622 = vmatprep.subr.mxu1 %v321_v40 }
 0x12f   :  { %638 = vmatpush3.msra.mxu1 %v321_v40 }
 0x130   :  { %623 = vmatprep.subr.mxu1 %v320_v41 }
 0x131   :  { %639 = vmatpush3.msra.mxu1 %v320_v41 }
 0x132   :  { %624 = vmatprep.subr.mxu1 %v319_v55 }
 0x133   :  { %640 = vmatpush3.msra.mxu1 %v319_v55 }
 0x134   :  { %625 = vmatprep.subr.mxu1 %v318_v56 }
 0x135   :  { %641 = vmatpush3.msra.mxu1 %v318_v56 }
 0x136   :  { %626 = vmatprep.subr.mxu1 %v317_v57 }
 0x137   :  { %642 = vmatpush3.msra.mxu1 %v317_v57 }
 0x138   :  { %627 = vmatprep.subr.mxu1 %v316_v58 }
 0x139   :  { %643 = vmatpush3.msra.mxu1 %v316_v58 }
 0x13a   :  { %628 = vmatprep.subr.mxu1 %v315_v59 }
 0x13b   :  { %644 = vmatpush3.msra.mxu1 %v315_v59 }
 0x13c   :  { %629 = vmatprep.subr.mxu1 %v314_v60 }
 0x13d   :  { %645 = vmatpush3.msra.mxu1 %v314_v60 }
 0x13e   :  { %630 = vmatprep.subr.mxu1 %v313_v61 }
 0x13f   :  { %646 = vmatpush3.msra.mxu1 %v313_v61 }
 0x140   :  { %631 = vmatprep.subr.mxu1 %v312_v62 }
 0x141   :  { %647 = vmatpush3.msra.mxu1 %v312_v62 }
 0x142   :  { %632 = vmatprep.subr.mxu1 %v311_v63 }
 0x143   :  { %648 = vmatpush3.msra.mxu1 %v311_v63 }
 0x144   :  { %633 = vmatprep.subr.mxu1 %v310_v0 }
 0x145   :  { %649 = vmatpush3.msra.mxu1 %v310_v0 }
 0x1e6   :  { %v576_v2 = vpop.f32.mrf.mxu1 }
 0x1e7   :  { %v293_v3 = vadd.f32 %v576_v2, %v442_v1 }
 0x1e8   :  { %v287_v4 = vpop.f32.mrf.mxu1 }
 0x1e9   :  { %v288_v5 = vadd.f32 %v442_v1, %v287_v4 }
 0x1ea   :  { %v579_v6 = vpop.f32.mrf.mxu1 }
 0x1eb   :  { %665 = vtanh.f32 %v288_v5  ;;  %v303_v7 = vadd.f32 %v579_v6, %v442_v1 }
 0x1ec   :  { %667 = vtanh.f32 %v293_v3  ;;  %v297_v8 = vpop.f32.mrf.mxu1 }
 0x1ed   :  { %v298_v9 = vadd.f32 %v442_v1, %v297_v8 }
 0x1ef   :  { %669 = vtanh.f32 %v298_v9 }
 0x1f0   :  { %671 = vtanh.f32 %v303_v7 }
 0x1f8   :  { %v666_v10 = vpop.eup %665 }
 0x1f9   :  { %v668_v11 = vpop.eup %667  ;;  %612 = vmatprep.mubr.f32.mxu0 %v666_v10 }
 0x1fa   :  { %613 = vmatmul.mubr.f32.vlgmr.msra.gmra.mxu0 %v668_v11 }
 0x1fc   :  { %v670_v12 = vpop.eup %669 }
 0x1fd   :  { %v672_v13 = vpop.eup %671  ;;  %615 = vmatprep.mubr.f32.mxu1 %v670_v12 }
 0x1fe   :  { %616 = vmatmul.mubr.f32.vlgmr.msra.gmra.mxu1 %v672_v13 }
 0x2ba   :  { %v614_v15 = vpop.f32.mrf.mxu0 }
 0x2bb   :  { %v405_v16 = vadd.f32 %v614_v15, %v443_v14 }
 0x2bc   :  { %v399_v17 = vpop.f32.mrf.mxu0 }
 0x2bd   :  { %419 = vst [vmem:[#allocation10 + $0x8] sm:$0xff] %v405_v16  ;;  %v400_v18 = vadd.f32 %v443_v14, %v399_v17 }
 0x2be   :  { %v617_v19 = vpop.f32.mrf.mxu1 }
 0x2bf   :  { %418 = vst [vmem:[#allocation10] sm:$0xff] %v400_v18  ;;  %v415_v20 = vadd.f32 %v617_v19, %v443_v14 }
 0x2c0   :  { %v409_v21 = vpop.f32.mrf.mxu1 }
 0x2c1   :  { %421 = vst [vmem:[#allocation10 + $0x18] sm:$0xff] %v415_v20  ;;  %v410_v22 = vadd.f32 %v443_v14, %v409_v21 }
 0x2c3   :  { %420 = vst [vmem:[#allocation10 + $0x10] sm:$0xff] %v410_v22 }
 0x2c4   :  { %764 = shalt.err (!%p761_p10)
}
 0x2c5   :  { %433 = dma.vmem_to_hbm [thread:$0]  %s428_s24, 512, %s874_s7, [#allocation4], %s783_s29, %s783_s29, %s784_s30  }
 0x2c6   :  { %779 = dma.done.wait [#allocation4], 512  }
 0x2c7   :  { %780 = vsyncadd [#allocation4], 4294966784 }
 0x2c8   :  { %437 = vsyncpa [#allocation3], 1 }
 0x2c9   :  { %438 = vsyncpa [#allocation6], 1 }
 0x2ca   :  { %439 = vsyncpa [#allocation9], 1 }
 0x2cb   :  { %440 = vsyncpa [#allocation4], 1 }

</bundles_post_ra>
